<compile_context>
chip_gen: v5e
topology: v5e:2x2
jax: 0.10.0
libtpu: 0.0.40
codegen_flags: <defaults>
</compile_context>

<pallas_src>
import functools

import jax
import jax.numpy as jnp
from jax.experimental import pallas as pl
from jax.experimental.pallas import tpu as pltpu


def _round_up(x, m):
    return ((x + m - 1) // m) * m


# Fast path is used when both the resident table and the in-kernel one-hot
# comfortably fit in VMEM.
_FAST_TABLE_BYTES = 4 * 1024 * 1024
_FAST_ONEHOT_BYTES = 2 * 1024 * 1024
_GROUP = 8  # rows gathered per grid step on the gather path


# ----------------------------------------------------------------------------
# Fast path: whole table resident in VMEM, single grid step.
# ----------------------------------------------------------------------------
def _cbow_fast_kernel(words_ref, table_ref, w_ref, b_ref, out_ref):
    # words_ref: (seq_pad, 1) int32, padded entries are -1 (never match).
    # table_ref: (nwords_pad, emb_size) f32 (padded rows are zero).
    # w_ref:     (emb_size, ntags_pad) f32.
    # b_ref:     (1, ntags_pad) f32.
    # out_ref:   (1, ntags_pad) f32.
    seq_pad = words_ref.shape[0]
    nwords_pad = table_ref.shape[0]

    vocab_iota = jax.lax.broadcasted_iota(jnp.int32, (seq_pad, nwords_pad), 1)
    onehot = (vocab_iota == words_ref[...]).astype(jnp.float32)   # (seq_pad, nwords_pad)
    counts = jnp.sum(onehot, axis=0, keepdims=True)               # (1, nwords_pad)
    emb_sum = jnp.dot(counts, table_ref[...],
                      preferred_element_type=jnp.float32)         # (1, emb_size)
    out = jnp.dot(emb_sum, w_ref[...],
                  preferred_element_type=jnp.float32) + b_ref[...]
    out_ref[...] = out.astype(out_ref.dtype)


def _cbow_fast(words_i32, params):
    table_pad = params["table_pad"]
    w_t, b_2d = params["w_t"], params["b_2d"]
    ntags, ntags_pad = params["ntags"], w_t.shape[1]
    seq = words_i32.shape[0]
    seq_pad = _round_up(seq, 8)

    words_col = jnp.full((seq_pad, 1), -1, jnp.int32).at[:seq, 0].set(words_i32)

    out_padded = pl.pallas_call(
        _cbow_fast_kernel,
        out_shape=jax.ShapeDtypeStruct((1, ntags_pad), jnp.float32),
    )(words_col, table_pad, w_t, b_2d)
    return out_padded[:, :ntags]


# ----------------------------------------------------------------------------
# Gather path: large vocab, data-dependent row gather, GROUP rows per step.
# ----------------------------------------------------------------------------
def _cbow_gather_kernel(words_ref, *refs, group, seq):
    # words_ref: (seq_pad,) int32 in SMEM (scalar prefetch; used by index_maps).
    # refs:      group x (1, emb_size) gathered rows, then w, b, out, acc.
    del words_ref  # addressing only
    row_refs = refs[:group]
    w_ref = refs[group]
    b_ref = refs[group + 1]
    out_ref = refs[group + 2]
    acc_ref = refs[group + 3]
    i = pl.program_id(0)

    @pl.when(i == 0)
    def _():
        acc_ref[...] = jnp.zeros_like(acc_ref)

    # Sum the GROUP gathered rows for this step.  Only the (static) case where
    # seq is not a multiple of `group` needs masking, and only on the padded
    # tail positions (padded word ids point at row 0, which must not count).
    need_mask = (seq % group) != 0
    total = None
    for g in range(group):
        r = row_refs[g][...].astype(jnp.float32)
        if need_mask:
            r = jnp.where(i * group + g < seq, r, jnp.zeros_like(r))
        total = r if total is None else total + r
    acc_ref[...] += total

    @pl.when(i == pl.num_programs(0) - 1)
    def _():
        out = jnp.dot(acc_ref[...], w_ref[...],
                      preferred_element_type=jnp.float32) + b_ref[...]
        out_ref[...] = out.astype(out_ref.dtype)


def _cbow_gather(words_i32, params, group=_GROUP):
    table = params["table"]
    w_t, b_2d = params["w_t"], params["b_2d"]
    ntags, ntags_pad = params["ntags"], w_t.shape[1]
    nwords, emb_size = table.shape
    seq = words_i32.shape[0]

    seq_pad = _round_up(seq, group)
    num_steps = seq_pad // group
    # Padded positions point at row 0; masked out inside the kernel.
    words_padded = jnp.zeros((seq_pad,), jnp.int32).at[:seq].set(words_i32)

    def make_row_spec(g):
        # Data-dependent row gather: DMA only row words[i*group + g] this step.
        return pl.BlockSpec((1, emb_size), lambda i, w, g=g: (w[i * group + g], 0))

    kernel = functools.partial(_cbow_gather_kernel, group=group, seq=seq)

    out_padded = pl.pallas_call(
        kernel,
        out_shape=jax.ShapeDtypeStruct((1, ntags_pad), jnp.float32),
        grid_spec=pltpu.PrefetchScalarGridSpec(
            num_scalar_prefetch=1,          # words -> SMEM, feeds the index_maps
            grid=(num_steps,),
            in_specs=(
                [make_row_spec(g) for g in range(group)]
                + [
                    # Weight / bias: constant block index -> resident in VMEM.
                    pl.BlockSpec((emb_size, ntags_pad), lambda i, w: (0, 0)),
                    pl.BlockSpec((1, ntags_pad), lambda i, w: (0, 0)),
                ]
            ),
            out_specs=pl.BlockSpec((1, ntags_pad), lambda i, w: (0, 0)),
            scratch_shapes=[pltpu.VMEM((1, emb_size), jnp.float32)],
        ),
        compiler_params=pltpu.CompilerParams(
            dimension_semantics=("arbitrary",)),   # sequential reduction axis
        cost_estimate=pl.CostEstimate(
            flops=2 * seq_pad * emb_size + 2 * emb_size * ntags_pad,
            transcendentals=0,
            bytes_accessed=4 * (seq_pad * emb_size      # gathered rows
                                + emb_size * ntags_pad  # weight
                                + 2 * ntags_pad         # bias + output
                                + seq_pad),             # word ids
        ),
    )(words_padded, *([table] * group), w_t, b_2d)
    return out_padded[:, :ntags]


# ----------------------------------------------------------------------------
# Parameter prep (one-time) and forward wrapper.
# ----------------------------------------------------------------------------
def prepare_cbow_params(emb_table, linear_w, linear_b):
    """One-time parameter transform (hoisted out of the per-call path)."""
    emb_table = emb_table.astype(jnp.float32)
    nwords, emb_size = emb_table.shape
    ntags = linear_w.shape[0]
    ntags_pad = _round_up(ntags, 128)   # lane-dense output tile

    w_t = jnp.zeros((emb_size, ntags_pad), jnp.float32).at[:, :ntags].set(
        linear_w.T.astype(jnp.float32))
    b_2d = jnp.zeros((1, ntags_pad), jnp.float32).at[:, :ntags].set(
        linear_b.astype(jnp.float32))

    nwords_pad = _round_up(nwords, 128)
    table_pad = None
    if nwords_pad * emb_size * 4 <= _FAST_TABLE_BYTES:
        table_pad = jnp.zeros((nwords_pad, emb_size), jnp.float32).at[:nwords].set(
            emb_table)

    return dict(table=emb_table, table_pad=table_pad, w_t=w_t, b_2d=b_2d,
                nwords=nwords, ntags=ntags)


def cbow_forward(words, params, force_gather=False):
    """words: (seq,) int ids.  Returns (1, ntags) f32, same as the PyTorch forward."""
    seq = words.shape[0]
    ntags = params["ntags"]

    if seq == 0:
        # PyTorch: sum over an empty dim is zero, so output is just the bias.
        return params["b_2d"][:, :ntags]

    # Clamp ids so an out-of-range id cannot trigger an OOB gather.
    words_i32 = jnp.clip(words.astype(jnp.int32), 0, params["nwords"] - 1)

    use_fast = (not force_gather) and (params["table_pad"] is not None)
    if use_fast:
        seq_pad = _round_up(seq, 8)
        nwords_pad = params["table_pad"].shape[0]
        use_fast = seq_pad * nwords_pad * 4 <= _FAST_ONEHOT_BYTES

    if use_fast:
        return _cbow_fast(words_i32, params)
    return _cbow_gather(words_i32, params)


if __name__ == "__main__":
    # Small, deterministic synthetic setup consistent with the module.
    nwords, ntags, emb_size, seq = 64, 5, 32, 8

    key = jax.random.PRNGKey(0)
    k_emb, k_w, k_b, k_words = jax.random.split(key, 4)

    emb_table = jax.random.normal(k_emb, (nwords, emb_size), dtype=jnp.float32)
    linear_w = jax.random.normal(k_w, (ntags, emb_size), dtype=jnp.float32) * 0.1
    linear_b = jax.random.normal(k_b, (ntags,), dtype=jnp.float32) * 0.1
    words = jax.random.randint(k_words, (seq,), 0, nwords, dtype=jnp.int32)

    params = prepare_cbow_params(emb_table, linear_w, linear_b)

    def reference(ws):
        return (emb_table[ws].sum(axis=0).reshape(1, -1) @ linear_w.T
                + linear_b.reshape(1, -1))

    # Fast (table-resident) path — selected automatically for this small vocab.
    out_fast = jax.block_until_ready(cbow_forward(words, params))
    assert out_fast.shape == (1, ntags), out_fast.shape
    assert jnp.allclose(out_fast, reference(words), atol=1e-4, rtol=1e-4)

    # Batched-gather path (the large-vocab path), forced here to exercise it.
    out_gather = jax.block_until_ready(cbow_forward(words, params, force_gather=True))
    assert out_gather.shape == (1, ntags), out_gather.shape
    assert jnp.allclose(out_gather, reference(words), atol=1e-4, rtol=1e-4)

    # Gather path with seq not a multiple of the group size (exercises masking).
    words2 = jax.random.randint(jax.random.PRNGKey(1), (seq + 3,), 0, nwords,
                                dtype=jnp.int32)
    out2 = jax.block_until_ready(cbow_forward(words2, params, force_gather=True))
    assert jnp.allclose(out2, reference(words2), atol=1e-4, rtol=1e-4)

    print("KERNEL_OK")
</pallas_src>

<mosaic_0001>
module attributes {stable_mosaic.version = 11 : i64} {
  func.func @_cbow_fast_kernel(%arg0: memref<8x1xi32, #tpu.memory_space<vmem>>, %arg1: memref<128x32xf32, #tpu.memory_space<vmem>>, %arg2: memref<32x128xf32, #tpu.memory_space<vmem>>, %arg3: memref<1x128xf32, #tpu.memory_space<vmem>>, %arg4: memref<1x128xf32, #tpu.memory_space<vmem>>) attributes {dimension_semantics = [], scalar_prefetch = 0 : i64, scratch_operands = 0 : i64, tpu.core_type = #tpu.core_type<tc>} {
    %0 = tpu.iota {dimensions = array<i32: 1>} : vector<8x128xi32>
    %c0 = arith.constant 0 : index
    %c0_0 = arith.constant 0 : index
    %1 = vector.load %arg0[%c0, %c0_0] : memref<8x1xi32, #tpu.memory_space<vmem>>, vector<8x1xi32>
    %2 = vector.broadcast %1 : vector<8x1xi32> to vector<8x128xi32>
    %3 = arith.cmpi eq, %0, %2 : vector<8x128xi32>
    %4 = arith.extui %3 : vector<8x128xi1> to vector<8x128xi32>
    %5 = arith.sitofp %4 : vector<8x128xi32> to vector<8x128xf32>
    %cst = arith.constant dense<0.000000e+00> : vector<128xf32>
    %6 = vector.multi_reduction <add>, %5, %cst [0] : vector<8x128xf32> to vector<128xf32>
    %7 = vector.shape_cast %6 : vector<128xf32> to vector<1x128xf32>
    %c0_1 = arith.constant 0 : index
    %c0_2 = arith.constant 0 : index
    %8 = vector.load %arg1[%c0_1, %c0_2] : memref<128x32xf32, #tpu.memory_space<vmem>>, vector<128x32xf32>
    %cst_3 = arith.constant dense<0.000000e+00> : vector<1x32xf32>
    %9 = tpu.matmul %7, %8, %cst_3 {dimension_numbers = #tpu.dot_dimension_numbers<[1], [0], [0], [1], [0, 0, 1, 1], [], []>} : vector<1x128xf32>, vector<128x32xf32>, vector<1x32xf32> -> vector<1x32xf32>
    %c0_4 = arith.constant 0 : index
    %c0_5 = arith.constant 0 : index
    %10 = vector.load %arg2[%c0_4, %c0_5] : memref<32x128xf32, #tpu.memory_space<vmem>>, vector<32x128xf32>
    %cst_6 = arith.constant dense<0.000000e+00> : vector<1x128xf32>
    %11 = tpu.matmul %9, %10, %cst_6 {dimension_numbers = #tpu.dot_dimension_numbers<[1], [0], [0], [1], [0, 0, 1, 1], [], []>} : vector<1x32xf32>, vector<32x128xf32>, vector<1x128xf32> -> vector<1x128xf32>
    %c0_7 = arith.constant 0 : index
    %c0_8 = arith.constant 0 : index
    %12 = vector.load %arg3[%c0_7, %c0_8] : memref<1x128xf32, #tpu.memory_space<vmem>>, vector<1x128xf32>
    %13 = arith.addf %11, %12 : vector<1x128xf32>
    %c0_9 = arith.constant 0 : index
    %c0_10 = arith.constant 0 : index
    %14 = vector.load %arg4[%c0_9, %c0_10] : memref<1x128xf32, #tpu.memory_space<vmem>>, vector<1x128xf32>
    tpu.vector_store %arg4[%c0_9, %c0_10], %13 {strides = array<i32>} : memref<1x128xf32, #tpu.memory_space<vmem>>, vector<1x128xf32>,
    return
  }
}

</mosaic_0001>

<bundles_post_ra>
// kernel: tpu_custom_call.1
= control target key start
LH: loop header
LB: loop body
LE: loop exit
PB: predicated region body
PF: predicated region fallthrough
CT: control target
= control target key end

     0   :  { %v147_v3 = vmov 0   ;;  %s244_s0 = inlined_call_operand.vmem [shape: s32[8,1], index: 0, kind: input, shape index: {}]   ;;  %s245_s1 = inlined_call_operand.vmem [shape: f32[128,32], index: 1, kind: input, shape index: {}]   ;;  %s246_s2 = inlined_call_operand.vmem [shape: f32[32,128], index: 2, kind: input, shape index: {}]   ;;  %s247_s3 = inlined_call_operand.vmem [shape: f32[1,128], index: 3, kind: input, shape index: {}]   ;;  %s248_s4 = inlined_call_operand.hbm [shape: f32[1,128], index: 4, kind: output, shape index: {}]  }
   0x1   :  { %v20_v0 = vld [vmem:[%s244_s0] sm:$0xff]  ;;  %v48_v1 = vld [vmem:[%s245_s1 + $0x78] sm:$0xff]  ;;  %v47_v2 = vld [vmem:[%s245_s1 + $0x70] sm:$0xff]  ;;  %120 = vset.pattern.permute.xlu0 %v147_v3 }
   0x2   :  { %49 = vmatpush.msra.mxu0 %v48_v1  ;;  %22 = vperm.xlu0 %120, %v20_v0   ;;  %v46_v4 = vld [vmem:[%s245_s1 + $0x68] sm:$0xff] }
   0x4   :  { %50 = vmatpush.msra.mxu0 %v47_v2 }
   0x5   :  { %9 = vsyncpa [#allocation3], 0  ;;  %v45_v5 = vld [vmem:[%s245_s1 + $0x60] sm:$0xff]  ;;  %v44_v6 = vld [vmem:[%s245_s1 + $0x58] sm:$0xff]  ;;  %v18_v21 = vlaneseq  ;;  %v148_v24 = vmov 0.0   ;;  %vm74_vm1 = vcmask 261120  }
   0x6   :  { %51 = vmatpush.msra.mxu0 %v46_v4  ;;  %v43_v7 = vld [vmem:[%s245_s1 + $0x50] sm:$0xff]  ;;  %v42_v8 = vld [vmem:[%s245_s1 + $0x48] sm:$0xff]  ;;  %v41_v9 = vld [vmem:[%s245_s1 + $0x40] sm:$0xff]  ;;  %s149_s30 = smov [#allocation2]   ;;  %s106_s8 = sshll.u32 %s248_s4, 4  ;;  %s107_s8 = int_to_ptr.hbm [resolvable:$true] %s106_s8 }
   0x7   :  { %v40_v10 = vld [vmem:[%s245_s1 + $0x38] sm:$0xff]  ;;  %v39_v11 = vld [vmem:[%s245_s1 + $0x30] sm:$0xff]  ;;  %v38_v12 = vld [vmem:[%s245_s1 + $0x28] sm:$0xff]  ;;  %v19_v22 = vand.u32 127, %v18_v21  ;;  %s104_s5 = sshll.u32 %s149_s30, 4  ;;  %s105_s5 = int_to_ptr.vmem [resolvable:$true] %s104_s5 }
   0x8   :  { %52 = vmatpush.msra.mxu0 %v45_v5  ;;  %v37_v13 = vld [vmem:[%s245_s1 + $0x20] sm:$0xff]  ;;  %v36_v14 = vld [vmem:[%s245_s1 + $0x18] sm:$0xff]  ;;  %v35_v15 = vld [vmem:[%s245_s1 + $0x10] sm:$0xff] }
   0x9   :  { %v34_v16 = vld [vmem:[%s245_s1 + $0x8] sm:$0xff]  ;;  %v33_v17 = vld [vmem:[%s245_s1] sm:$0xff]  ;;  %v72_v18 = vld [vmem:[%s246_s2 + $0x18] sm:$0xff] }
   0xa   :  { %53 = vmatpush.msra.mxu0 %v44_v6  ;;  %v71_v19 = vld [vmem:[%s246_s2 + $0x10] sm:$0xff]  ;;  %90 = vmatpush.msra.mxu1 %v72_v18  ;;  %v70_v20 = vld [vmem:[%s246_s2 + $0x8] sm:$0xff]  ;;  %v69_v32 = vld [vmem:[%s246_s2] sm:$0xff] }
   0xb   :  { %v73_v34 = vld [vmem:[%s247_s3] sm:$0x1] }
   0xc   :  { %54 = vmatpush.msra.mxu0 %v43_v7  ;;  %91 = vmatpush.msra.mxu1 %v71_v19 }
   0xe   :  { %55 = vmatpush.msra.mxu0 %v42_v8  ;;  %92 = vmatpush.msra.mxu1 %v70_v20 }
  0x10   :  { %56 = vmatpush.msra.mxu0 %v41_v9  ;;  %93 = vmatpush.msra.mxu1 %v69_v32 }
  0x12   :  { %57 = vmatpush.msra.mxu0 %v40_v10 }
  0x14   :  { %58 = vmatpush.msra.mxu0 %v39_v11 }
  0x16   :  { %59 = vmatpush.msra.mxu0 %v38_v12 }
  0x18   :  { %60 = vmatpush.msra.mxu0 %v37_v13 }
  0x1a   :  { %61 = vmatpush.msra.mxu0 %v36_v14 }
  0x1c   :  { %62 = vmatpush.msra.mxu0 %v35_v15 }
  0x1e   :  { %63 = vmatpush.msra.mxu0 %v34_v16 }
  0x20   :  { %64 = vmatpush.msra.mxu0 %v33_v17 }
  0x74   :  { %v23_v23 = vpop.permute.xlu0 %22 }
  0x75   :  { %vm24_vm0 = vcmp.eq.s32.totalorder %v19_v22, %v23_v23 }
  0x76   :  { %v115_v25 = vsel %vm24_vm0, 1.0, %v148_v24 }
  0x77   :  { %v27_v26 = vrot.slane %v115_v25, 4 }
  0x79   :  { %v28_v27 = vadd.f32 %v115_v25, %v27_v26 }
  0x7b   :  { %v29_v28 = vrot.slane %v28_v27, 2 }
  0x7d   :  { %v30_v29 = vadd.f32 %v29_v28, %v28_v27 }
  0x7f   :  { %v31_v30 = vrot.slane %v30_v29, 1 }
  0x81   :  { %v32_v31 = vadd.f32 %v31_v30, %v30_v29 }
  0x83   :  { %65 = vmatmul.f32.vlgmr.msra.gmra.mxu0 %v32_v31 }
 0x100   :  { %v66_v33 = vpop.f32.mrf.mxu0 }
 0x101   :  { %116 = vmatmul.msk.f32.vlgmr.msra.gmra.mxu1 %vm74_vm1, %v66_v33 }
 0x17e   :  { %v95_v35 = vpop.f32.mrf.mxu1 }
 0x17f   :  { %v96_v36 = vadd.f32 %v95_v35, %v73_v34 }
 0x181   :  { %98 = vst [vmem:[#allocation2] sm:$0x1] %v96_v36 }
 0x182   :  { %109 = dma.vmem_to_hbm [thread:$0]  %s105_s5, 16, %s107_s8, [#allocation3]  }
 0x183   :  { %145 = dma.done.wait [#allocation3], 16  }
 0x184   :  { %146 = vsyncadd [#allocation3], 4294967280 }
 0x185   :  { %114 = vsyncpa [#allocation3], 1 }

</bundles_post_ra>
